<compile_context>
chip_gen: v6e
topology: v6e:2x2x1
jax: 0.10.0
libtpu: 0.0.40
codegen_flags: <defaults>
</compile_context>

<pallas_src>
import functools

import jax
import jax.numpy as jnp
from jax.experimental import pallas as pl
from jax.experimental.pallas import tpu as pltpu


_GRANULE = 1024   # batch-row granularity of a grid tile in multi-tile mode


def _round_up(x, m):
    return ((x + m - 1) // m) * m


def _dense_view(x, w):
    """Lane-dense 2D view of x=(N, C) plus the matching periodic weight row.

    Folds k consecutive batch rows into the lane dimension (pure reshape of a
    contiguous array == bitcast: no HBM copy, no padding) whenever k*C <= 128
    and k divides N, and tiles the weight vector cyclically so that
        sum(view * w_row)  ==  sum_{i,c} x[i, c] * w[c].
    Falls back to the natural (N, C) layout when no fold is possible (still
    correct, just lane-sparser).
    """
    n, c = x.shape
    w_row = jnp.reshape(w, (1, c)).astype(jnp.float32)
    if c % 128 == 0:                       # already lane-dense
        return x, w_row
    k = 1
    while 2 * k * c <= 128 and n % (2 * k) == 0:
        k *= 2
    if k == 1:
        return x, w_row
    return x.reshape(n // k, k * c), jnp.tile(w_row, (1, k))


def _choose_batch_tile(n, per_row_vmem_bytes, tile_set_budget=10 << 20):
    """Batch rows per grid step: as many as a ~10 MiB VMEM tile-set allows
    (Pallas double-buffers -> ~20 MiB), a multiple of _GRANULE, with no small
    artificial cap so the ~0.35 us per-step overhead stays negligible even at
    v7x HBM bandwidth."""
    tb = tile_set_budget // max(per_row_vmem_bytes, 1)
    return max(_GRANULE, (tb // _GRANULE) * _GRANULE)


def _dre_kernel(emb_ref, gum_ref, lab_ref, w_emb_ref, w_gum_ref, w_cls_ref,
                out_ref, *, emb_rows, gum_rows, n_rows):
    i = pl.program_id(0)

    def masked_weighted_sum(ref, w_row_ref, total_rows):
        # Sum over the VALID rows of this tile of  row . periodic_weight_row.
        # The last grid tile may extend past the array; those VMEM rows are
        # stale/garbage and MUST be gated off (select, so NaN garbage is safe).
        tr = ref.shape[0]
        rem = total_rows - i * tr                              # valid rows here
        rid = jax.lax.broadcasted_iota(jnp.int32, (tr, 1), 0)
        x = jnp.where(rid < rem, ref[...].astype(jnp.float32), 0.0)
        colsum = jnp.sum(x, axis=0, keepdims=True)             # VPU adds
        return jnp.sum(colsum * w_row_ref[...])                # lane reduce (XLU)

    # 2 * sum(emb @ w_emb)  and  sum(gumbel @ w_sensi)  -- no MXU anywhere.
    emb_part = masked_weighted_sum(emb_ref, w_emb_ref, emb_rows)
    gum_part = masked_weighted_sum(gum_ref, w_gum_ref, gum_rows)

    # sum(one_hot(labels) @ w_sensi) == sum_j w_sensi[label_j]
    # labels are a lane-dense (1, tb) int32 row; classes run along sublanes of
    # the zero-padded (ns8, 1) weight column.  Garbage lanes past N are gated.
    ns8 = w_cls_ref.shape[0]
    tb = lab_ref.shape[1]
    rem_n = n_rows - i * tb
    cls = jax.lax.broadcasted_iota(jnp.int32, (ns8, tb), 0)
    col = jax.lax.broadcasted_iota(jnp.int32, (1, tb), 1)
    hit = (cls == lab_ref[...]) & (col < rem_n)
    pos_part = jnp.sum(jnp.where(hit, w_cls_ref[...], 0.0))

    total = 2.0 * emb_part + gum_part + pos_part

    # Cheap epilogue: splat the per-tile partial across the aligned (8, 128)
    # output block (single unmasked lane-dense store); the wrapper reads [*, 0].
    out_ref[...] = jnp.broadcast_to(total, out_ref.shape)


def density_ratio_estimator(emb, sensitive_group, sensitive_gumbel,
                            w_emb, w_sensi, *, batch_tile=None):
    """Forward pass of DensityRatioEstimator.

    emb: (N, nfeat); sensitive_group: (N,) int; sensitive_gumbel: (N, nsens);
    w_emb / w_sensi: nn.Linear(nfeat,1) / nn.Linear(nsens,1) weights (any
    shape holding nfeat / nsens elements).  Returns the scalar
    mean(pos_logits + neg_logits) / 2.
    """
    n, nfeat = emb.shape
    nsens = sensitive_gumbel.shape[1]

    # Lane-dense, copy-free views of the two streamed operands (+ matching
    # cyclically tiled weight rows).  No jnp.pad of the big arrays anywhere.
    emb_v, w_emb_row = _dense_view(emb, w_emb)
    gum_v, w_gum_row = _dense_view(sensitive_gumbel, w_sensi)
    labels = jnp.reshape(sensitive_group.astype(jnp.int32), (1, n))

    ns8 = _round_up(nsens, 8)
    w_cls = jnp.pad(jnp.reshape(w_sensi, (nsens, 1)).astype(jnp.float32),
                    ((0, ns8 - nsens), (0, 0)))       # tiny; classes on sublanes

    emb_rows, emb_w = emb_v.shape
    gum_rows, gum_w = gum_v.shape

    if batch_tile is None:
        # VMEM bytes per batch row (lane padding of narrow widths accounted).
        per_row = ((_round_up(emb_w, 128) * emb_v.dtype.itemsize * emb_rows) // n
                   + (_round_up(gum_w, 128) * gum_v.dtype.itemsize * gum_rows) // n
                   + 32)                               # labels, sublane-padded
        batch_tile = _choose_batch_tile(n, per_row)

    if n <= batch_tile:
        # Single tile: blocks are the full arrays (always layout-legal).
        num_tiles, tb, tre, trg = 1, n, emb_rows, gum_rows
    else:
        assert batch_tile % _GRANULE == 0, "batch_tile must be a multiple of 1024"
        num_tiles = (n + batch_tile - 1) // batch_tile
        tb = batch_tile
        tre = batch_tile * nfeat // emb_w              # view rows per grid step
        trg = batch_tile * nsens // gum_w

    # Explicit scoped-VMEM request: double-buffered input blocks + headroom.
    # v5e's 16 MiB scoped default would otherwise shrink the pipeline; this
    # stays well under v7x's 64 MiB physical per-TC VMEM.
    def blk_bytes(rows, width, itemsize):
        return _round_up(rows, 8) * _round_up(width, 128) * itemsize

    in_blocks = (blk_bytes(tre, emb_w, emb_v.dtype.itemsize)
                 + blk_bytes(trg, gum_w, gum_v.dtype.itemsize)
                 + blk_bytes(1, tb, 4))
    vmem_limit = int(min(max(2 * in_blocks + (8 << 20), 32 << 20), 60 << 20))

    kernel = functools.partial(_dre_kernel, emb_rows=emb_rows,
                               gum_rows=gum_rows, n_rows=n)

    cost = pl.CostEstimate(
        flops=2 * n * (nfeat + nsens) + 2 * n,
        transcendentals=0,
        bytes_accessed=(emb.size * emb.dtype.itemsize
                        + sensitive_gumbel.size * sensitive_gumbel.dtype.itemsize
                        + n * 4 + num_tiles * 8 * 128 * 4),
    )

    partials = pl.pallas_call(
        kernel,
        out_shape=jax.ShapeDtypeStruct((num_tiles * 8, 128), jnp.float32),
        grid=(num_tiles,),
        in_specs=[
            pl.BlockSpec((tre, emb_w), lambda i: (i, 0)),   # emb   (lane-dense view)
            pl.BlockSpec((trg, gum_w), lambda i: (i, 0)),   # gumbel (lane-dense view)
            pl.BlockSpec((1, tb), lambda i: (0, i)),        # labels row
            pl.BlockSpec((1, emb_w), lambda i: (0, 0)),     # w_emb tiled row (resident)
            pl.BlockSpec((1, gum_w), lambda i: (0, 0)),     # w_sensi tiled row
            pl.BlockSpec((ns8, 1), lambda i: (0, 0)),       # w_sensi class column
        ],
        out_specs=pl.BlockSpec((8, 128), lambda i: (i, 0)),
        compiler_params=pltpu.CompilerParams(
            # Independent tiles -> megacore sharding where available.
            # TODO(synk): on v7x a CORE_PARALLEL leading grid axis (or
            # pl.core_map) would guarantee the row stream splits across both
            # TensorCores; kept generation-agnostic here.
            dimension_semantics=("parallel",),
            vmem_limit_bytes=vmem_limit,
        ),
        cost_estimate=cost,
    )(emb_v, gum_v, labels, w_emb_row, w_gum_row, w_cls)

    # Per-tile partials live at element [tile, 0]; final reduction stays in
    # f32 and the division uses the TRUE batch size.
    total = jnp.sum(partials.reshape(num_tiles, 8 * 128)[:, 0])
    return total / (2.0 * n)


def _reference(emb, sensitive_group, sensitive_gumbel, w_emb, w_sensi, nsens):
    we = jnp.reshape(w_emb, (-1, 1)).astype(jnp.float32)
    ws = jnp.reshape(w_sensi, (-1, 1)).astype(jnp.float32)
    onehot = jax.nn.one_hot(sensitive_group, nsens, dtype=jnp.float32)
    emb_wx = emb.astype(jnp.float32) @ we
    pos = emb_wx + onehot @ ws
    neg = emb_wx + sensitive_gumbel.astype(jnp.float32) @ ws
    return jnp.mean(pos + neg) / 2.0


if __name__ == "__main__":
    # Small shapes consistent with the module: batch N=8, nfeat=32, nsensitive=4.
    N, NFEAT, NSENS = 8, 32, 4

    key = jax.random.PRNGKey(0)
    k_emb, k_grp, k_gum, k_we, k_ws, k2 = jax.random.split(key, 6)

    emb = jax.random.normal(k_emb, (N, NFEAT), dtype=jnp.float32)
    sensitive_group = jax.random.randint(k_grp, (N,), 0, NSENS, dtype=jnp.int32)
    sensitive_gumbel = jax.nn.softmax(
        jax.random.normal(k_gum, (N, NSENS), dtype=jnp.float32), axis=-1)

    # Synthetic nn.Linear(nfeat,1)/nn.Linear(nsensitive,1) weights (no bias).
    w_emb = jax.random.normal(k_we, (NFEAT, 1), dtype=jnp.float32) / jnp.sqrt(NFEAT)
    w_sensi = jax.random.normal(k_ws, (NSENS, 1), dtype=jnp.float32) / jnp.sqrt(NSENS)

    out = density_ratio_estimator(emb, sensitive_group, sensitive_gumbel,
                                  w_emb, w_sensi)
    out = jax.block_until_ready(out)
    ref = _reference(emb, sensitive_group, sensitive_gumbel, w_emb, w_sensi, NSENS)
    assert jnp.allclose(out, ref, atol=1e-5, rtol=1e-5), (out, ref)

    # Second check: multi-tile grid with a non-dividing batch, exercising the
    # no-pad path (in-kernel masking of the last partial tile), the partial
    # lane-fold for gumbel, and the true-N divisor.
    N2 = 2500
    k_e2, k_g2, k_u2 = jax.random.split(k2, 3)
    emb2 = jax.random.normal(k_e2, (N2, NFEAT), dtype=jnp.float32)
    grp2 = jax.random.randint(k_g2, (N2,), 0, NSENS, dtype=jnp.int32)
    gum2 = jax.nn.softmax(
        jax.random.normal(k_u2, (N2, NSENS), dtype=jnp.float32), axis=-1)

    out2 = density_ratio_estimator(emb2, grp2, gum2, w_emb, w_sensi,
                                   batch_tile=1024)
    out2 = jax.block_until_ready(out2)
    ref2 = _reference(emb2, grp2, gum2, w_emb, w_sensi, NSENS)
    assert jnp.allclose(out2, ref2, atol=1e-4, rtol=1e-4), (out2, ref2)

    print("KERNEL_OK")
</pallas_src>

<mosaic_0001>
module attributes {stable_mosaic.version = 11 : i64} {
  func.func @_dre_kernel(%arg0: i32, %arg1: memref<2x128xf32, #tpu.memory_space<vmem>>, %arg2: memref<1x32xf32, #tpu.memory_space<vmem>>, %arg3: memref<1x8xi32, #tpu.memory_space<vmem>>, %arg4: memref<1x128xf32, #tpu.memory_space<vmem>>, %arg5: memref<1x32xf32, #tpu.memory_space<vmem>>, %arg6: memref<8x1xf32, #tpu.memory_space<vmem>>, %arg7: memref<8x128xf32, #tpu.memory_space<vmem>>) attributes {dimension_semantics = [#tpu.dimension_semantics<parallel>], iteration_bounds = array<i64: 1>, scalar_prefetch = 0 : i64, scratch_operands = 0 : i64, tpu.core_type = #tpu.core_type<tc>, window_params = [{transform_indices = @transform_0, window_bounds = array<i64: 2, 128>}, {transform_indices = @transform_1, window_bounds = array<i64: 1, 32>}, {transform_indices = @transform_2, window_bounds = array<i64: 1, 8>}, {pipeline_mode = #tpu.pipeline_mode<synchronous>, transform_indices = @transform_3, window_bounds = array<i64: 1, 128>}, {pipeline_mode = #tpu.pipeline_mode<synchronous>, transform_indices = @transform_4, window_bounds = array<i64: 1, 32>}, {pipeline_mode = #tpu.pipeline_mode<synchronous>, transform_indices = @transform_5, window_bounds = array<i64: 8, 1>}, {transform_indices = @transform_6, window_bounds = array<i64: 8, 128>}]} {
    %c2_i32 = arith.constant 2 : i32
    %0 = arith.muli %arg0, %c2_i32 : i32
    %c2_i32_0 = arith.constant 2 : i32
    %1 = arith.subi %c2_i32_0, %0 : i32
    %2 = tpu.iota {dimensions = array<i32: 0>} : vector<2x1xi32>
    %3 = vector.broadcast %1 : i32 to vector<2x1xi32>
    %4 = arith.cmpi slt, %2, %3 : vector<2x1xi32>
    %c0 = arith.constant 0 : index
    %c0_1 = arith.constant 0 : index
    %5 = vector.load %arg1[%c0, %c0_1] : memref<2x128xf32, #tpu.memory_space<vmem>>, vector<2x128xf32>
    %cst = arith.constant 0.000000e+00 : f32
    %6 = vector.shape_cast %4 : vector<2x1xi1> to vector<2x1xi1>
    %7 = vector.broadcast %6 : vector<2x1xi1> to vector<2x128xi1>
    %8 = vector.broadcast %cst : f32 to vector<2x128xf32>
    %9 = arith.select %7, %5, %8 : vector<2x128xi1>, vector<2x128xf32>
    %cst_2 = arith.constant dense<0.000000e+00> : vector<128xf32>
    %10 = vector.multi_reduction <add>, %9, %cst_2 [0] : vector<2x128xf32> to vector<128xf32>
    %11 = vector.shape_cast %10 : vector<128xf32> to vector<1x128xf32>
    %c0_3 = arith.constant 0 : index
    %c0_4 = arith.constant 0 : index
    %12 = vector.load %arg4[%c0_3, %c0_4] : memref<1x128xf32, #tpu.memory_space<vmem>>, vector<1x128xf32>
    %13 = arith.mulf %11, %12 : vector<1x128xf32>
    %14 = vector.shape_cast %13 : vector<1x128xf32> to vector<1x1x128xf32>
    %cst_5 = arith.constant dense<0.000000e+00> : vector<1xf32>
    %15 = vector.multi_reduction <add>, %14, %cst_5 [1, 2] : vector<1x1x128xf32> to vector<1xf32>
    %16 = vector.shape_cast %15 : vector<1xf32> to vector<1x1x1xf32>
    %17 = vector.extract %16[0, 0, 0] : f32 from vector<1x1x1xf32>
    %c1_i32 = arith.constant 1 : i32
    %18 = arith.muli %arg0, %c1_i32 : i32
    %c1_i32_6 = arith.constant 1 : i32
    %19 = arith.subi %c1_i32_6, %18 : i32
    %20 = tpu.iota {dimensions = array<i32: 0>} : vector<1x1xi32>
    %21 = vector.broadcast %19 : i32 to vector<1x1xi32>
    %22 = arith.cmpi slt, %20, %21 : vector<1x1xi32>
    %c0_7 = arith.constant 0 : index
    %c0_8 = arith.constant 0 : index
    %23 = vector.load %arg2[%c0_7, %c0_8] : memref<1x32xf32, #tpu.memory_space<vmem>>, vector<1x32xf32>
    %cst_9 = arith.constant 0.000000e+00 : f32
    %24 = vector.shape_cast %22 : vector<1x1xi1> to vector<1x1xi1>
    %25 = vector.broadcast %24 : vector<1x1xi1> to vector<1x32xi1>
    %26 = vector.broadcast %cst_9 : f32 to vector<1x32xf32>
    %27 = arith.select %25, %23, %26 : vector<1x32xi1>, vector<1x32xf32>
    %cst_10 = arith.constant dense<0.000000e+00> : vector<32xf32>
    %28 = vector.multi_reduction <add>, %27, %cst_10 [0] : vector<1x32xf32> to vector<32xf32>
    %29 = vector.shape_cast %28 : vector<32xf32> to vector<1x32xf32>
    %c0_11 = arith.constant 0 : index
    %c0_12 = arith.constant 0 : index
    %30 = vector.load %arg5[%c0_11, %c0_12] : memref<1x32xf32, #tpu.memory_space<vmem>>, vector<1x32xf32>
    %31 = arith.mulf %29, %30 : vector<1x32xf32>
    %32 = vector.shape_cast %31 : vector<1x32xf32> to vector<1x1x32xf32>
    %cst_13 = arith.constant dense<0.000000e+00> : vector<1xf32>
    %33 = vector.multi_reduction <add>, %32, %cst_13 [1, 2] : vector<1x1x32xf32> to vector<1xf32>
    %34 = vector.shape_cast %33 : vector<1xf32> to vector<1x1x1xf32>
    %35 = vector.extract %34[0, 0, 0] : f32 from vector<1x1x1xf32>
    %c8_i32 = arith.constant 8 : i32
    %36 = arith.muli %arg0, %c8_i32 : i32
    %c8_i32_14 = arith.constant 8 : i32
    %37 = arith.subi %c8_i32_14, %36 : i32
    %38 = tpu.iota {dimensions = array<i32: 0>} : vector<8x8xi32>
    %39 = tpu.iota {dimensions = array<i32: 1>} : vector<1x8xi32>
    %c0_15 = arith.constant 0 : index
    %c0_16 = arith.constant 0 : index
    %40 = vector.load %arg3[%c0_15, %c0_16] : memref<1x8xi32, #tpu.memory_space<vmem>>, vector<1x8xi32>
    %41 = vector.broadcast %40 : vector<1x8xi32> to vector<8x8xi32>
    %42 = arith.cmpi eq, %38, %41 : vector<8x8xi32>
    %43 = vector.broadcast %37 : i32 to vector<1x8xi32>
    %44 = arith.cmpi slt, %39, %43 : vector<1x8xi32>
    %45 = vector.broadcast %44 : vector<1x8xi1> to vector<8x8xi1>
    %46 = arith.andi %42, %45 : vector<8x8xi1>
    %c0_17 = arith.constant 0 : index
    %c0_18 = arith.constant 0 : index
    %47 = vector.load %arg6[%c0_17, %c0_18] : memref<8x1xf32, #tpu.memory_space<vmem>>, vector<8x1xf32>
    %cst_19 = arith.constant 0.000000e+00 : f32
    %48 = vector.shape_cast %47 : vector<8x1xf32> to vector<8x1xf32>
    %49 = vector.broadcast %48 : vector<8x1xf32> to vector<8x8xf32>
    %50 = vector.broadcast %cst_19 : f32 to vector<8x8xf32>
    %51 = arith.select %46, %49, %50 : vector<8x8xi1>, vector<8x8xf32>
    %52 = vector.shape_cast %51 : vector<8x8xf32> to vector<1x8x8xf32>
    %cst_20 = arith.constant dense<0.000000e+00> : vector<1xf32>
    %53 = vector.multi_reduction <add>, %52, %cst_20 [1, 2] : vector<1x8x8xf32> to vector<1xf32>
    %54 = vector.shape_cast %53 : vector<1xf32> to vector<1x1x1xf32>
    %55 = vector.extract %54[0, 0, 0] : f32 from vector<1x1x1xf32>
    %cst_21 = arith.constant 2.000000e+00 : f32
    %56 = arith.mulf %cst_21, %17 : f32
    %57 = arith.addf %56, %35 : f32
    %58 = arith.addf %57, %55 : f32
    %59 = vector.broadcast %58 : f32 to vector<8x128xf32>
    %c0_22 = arith.constant 0 : index
    %c0_23 = arith.constant 0 : index
    %60 = vector.load %arg7[%c0_22, %c0_23] : memref<8x128xf32, #tpu.memory_space<vmem>>, vector<8x128xf32>
    tpu.vector_store %arg7[%c0_22, %c0_23], %59 {strides = array<i32>} : memref<8x128xf32, #tpu.memory_space<vmem>>, vector<8x128xf32>,
    return
  }
  func.func @transform_0(%arg0: i32) -> (i32, i32) {
    %c0_i32 = arith.constant 0 : i32
    %c0_i32_0 = arith.constant 0 : i32
    return %arg0, %c0_i32 : i32, i32
  }
  func.func @transform_1(%arg0: i32) -> (i32, i32) {
    %c0_i32 = arith.constant 0 : i32
    %c0_i32_0 = arith.constant 0 : i32
    return %arg0, %c0_i32 : i32, i32
  }
  func.func @transform_2(%arg0: i32) -> (i32, i32) {
    %c0_i32 = arith.constant 0 : i32
    %c0_i32_0 = arith.constant 0 : i32
    return %c0_i32, %arg0 : i32, i32
  }
  func.func @transform_3(%arg0: i32) -> (i32, i32) {
    %c0_i32 = arith.constant 0 : i32
    %c0_i32_0 = arith.constant 0 : i32
    %c0_i32_1 = arith.constant 0 : i32
    return %c0_i32, %c0_i32_0 : i32, i32
  }
  func.func @transform_4(%arg0: i32) -> (i32, i32) {
    %c0_i32 = arith.constant 0 : i32
    %c0_i32_0 = arith.constant 0 : i32
    %c0_i32_1 = arith.constant 0 : i32
    return %c0_i32, %c0_i32_0 : i32, i32
  }
  func.func @transform_5(%arg0: i32) -> (i32, i32) {
    %c0_i32 = arith.constant 0 : i32
    %c0_i32_0 = arith.constant 0 : i32
    %c0_i32_1 = arith.constant 0 : i32
    return %c0_i32, %c0_i32_0 : i32, i32
  }
  func.func @transform_6(%arg0: i32) -> (i32, i32) {
    %c0_i32 = arith.constant 0 : i32
    %c0_i32_0 = arith.constant 0 : i32
    return %arg0, %c0_i32 : i32, i32
  }
}

</mosaic_0001>

<bundles_post_ra>
// kernel: tpu_custom_call.1
= control target key start
LH: loop header
LB: loop body
LE: loop exit
PB: predicated region body
PF: predicated region fallthrough
CT: control target
= control target key end

     0   :  { %vm34_vm0 = vcmask 1041408   ;;  %v162_v2 = vmov 0   ;;  %vm65_vm1 = vcmask 253952   ;;  %s220_s0 = inlined_call_operand.vmem [shape: f32[2,128], index: 0, kind: input, shape index: {}]   ;;  %s221_s1 = inlined_call_operand.vmem [shape: f32[1,32], index: 1, kind: input, shape index: {}]   ;;  %s222_s2 = inlined_call_operand.vmem [shape: s32[1,8], index: 2, kind: input, shape index: {}]   ;;  %s223_s3 = inlined_call_operand.vmem [shape: f32[1,128], index: 3, kind: input, shape index: {}]   ;;  %s224_s4 = inlined_call_operand.vmem [shape: f32[1,32], index: 4, kind: input, shape index: {}]   ;;  %s225_s5 = inlined_call_operand.vmem [shape: f32[8,1], index: 5, kind: input, shape index: {}]   ;;  %s226_s6 = inlined_call_operand.hbm [shape: f32[8,128], index: 6, kind: output, shape index: {}]  }
   0x1   :  { %v91_v0 = vld [vmem:[%s225_s5] sm:$0xff]  ;;  %139 = vset.pattern.permute.xlu0 %v162_v2 }
   0x2   :  { %v129_v1 = vld [vmem:[%s220_s0] sm:$0x3]  ;;  %94 = vperm.xlu0 %139, %v91_v0  }
   0x3   :  { %v35_v3 = vsel %vm34_vm0, %v129_v1, 0.0  ;;  %v130_v4 = vld [vmem:[%s221_s1] sm:$0x1] }
   0x4   :  { %v36_v5 = vrot.slane %v35_v3, 4  ;;  %v63_v6 = vld [vmem:[%s224_s4] sm:$0x1] }
   0x5   :  { %v64_v7 = vmul.f32 %v130_v4, %v63_v6 }
   0x6   :  { %11 = vsyncpa [#allocation3], 0  ;;  %v37_v9 = vadd.f32 %v36_v5, %v35_v3  ;;  %v42_v14 = vld [vmem:[%s223_s3] sm:$0x1]  ;;  %vm44_vm2 = vcmask 1040384   ;;  %v26_v17 = vlaneseq  ;;  %vm98_vm6 = vcmask 64512  }
   0x7   :  { %v66_v8 = vsel %vm65_vm1, %v64_v7, 0.0  ;;  %v128_v20 = vld [vmem:[%s222_s2] ss:$0 sm:$0xff]  ;;  %s163_s7 = smov [#allocation2]  }
   0x8   :  { %67 = vadd.xlane.f32.xlu1 %v66_v8  ;;  %v38_v10 = vrot.slane %v37_v9, 2  ;;  %v27_v18 = vshrl.u32 %v26_v17, 7  ;;  %v79_v19 = vand.u32 127, %v26_v17  ;;  %s120_s8 = sshll.u32 %s163_s7, 4  ;;  %s121_s8 = int_to_ptr.vmem [resolvable:$true] %s120_s8 }
   0x9   :  { %s140_s11 = scalar_lea.vmem %s121_s8, 128  ;;  %p145_p1 = scmp.lt.s32.totalorder %s121_s8, %s121_s8 }
   0xa   :  { %v39_v11 = vadd.f32 %v38_v10, %v37_v9  ;;  %vm85_vm3 = vcmp.eq.s32.totalorder %v27_v18, %v128_v20  ;;  %vm87_vm4 = vcmp.lt.s32.totalorder %v79_v19, 8  ;;  %p141_p0 = scmp.ne.s32.totalorder %s121_s8, %s140_s11  ;;  %p146_p2 = scmp.lt.s32.totalorder %s140_s11, %s140_s11 }
   0xb   :  { %vm90_vm5 = vmand %vm85_vm3, %vm87_vm4 }
   0xc   :  { %v40_v12 = vrot.slane %v39_v11, 1  ;;  %p147_p3 = por %p146_p2, %p145_p1 }
   0xe   :  { %v41_v13 = vadd.f32 %v40_v12, %v39_v11  ;;  %p148_p4 = pnand %p147_p3, %p141_p0 }
  0x10   :  { %v43_v15 = vmul.f32 %v42_v14, %v41_v13 }
  0x12   :  { %v45_v16 = vsel %vm44_vm2, %v43_v15, 0.0 }
  0x21   :  { %46 = vadd.xlane.f32.xlu0 %v45_v16 }
  0x7d   :  { %v95_v21 = vpop.permute.xlu0 %94 }
  0x7e   :  { %v97_v22 = vsel %vm90_vm5, %v95_v21, 0.0 }
  0x7f   :  { %v99_v23 = vsel %vm98_vm6, %v97_v22, 0.0 }
  0x80   :  { %100 = vadd.xlane.f32.xlu1 %v99_v23 }
  0x91   :  { %v68_v24 = vpop.xlane.xlu1 %67 }
  0x92   :  { %v69_v25 = vrot.slane %v68_v24, 4 }
  0x94   :  { %v70_v26 = vadd.f32 %v69_v25, %v68_v24 }
  0x96   :  { %v71_v27 = vrot.slane %v70_v26, 2 }
  0x98   :  { %v72_v30 = vadd.f32 %v71_v27, %v70_v26 }
  0x9a   :  { %v73_v33 = vrot.slane %v72_v30, 1 }
  0x9c   :  { %v74_v36 = vadd.f32 %v73_v33, %v72_v30 }
  0xaa   :  { %v47_v28 = vpop.xlane.xlu0 %46 }
  0xab   :  { %v48_v29 = vrot.slane %v47_v28, 4 }
  0xad   :  { %v49_v31 = vadd.f32 %v48_v29, %v47_v28 }
  0xaf   :  { %v50_v32 = vrot.slane %v49_v31, 2 }
  0xb1   :  { %v51_v34 = vadd.f32 %v50_v32, %v49_v31 }
  0xb3   :  { %v52_v35 = vrot.slane %v51_v34, 1 }
  0xb5   :  { %v53_v37 = vadd.f32 %v52_v35, %v51_v34 }
  0xb7   :  { %131 = vpush %v53_v37 }
  0xb8   :  { %133 = vpush %v74_v36 }
  0xe8   :  { %s132_s2 = spop %131 }
  0xe9   :  { %s109_s3 = smul.f32 2.0, %s132_s2  ;;  %s134_s29 = spop %133 }
  0xeb   :  { %s110_s30 = sadd.f32 %s134_s29, %s109_s3 }
 0x109   :  { %v101_v38 = vpop.xlane.xlu1 %100 }
 0x10a   :  { %v102_v39 = vrot.slane %v101_v38, 4 }
 0x10c   :  { %v103_v40 = vadd.f32 %v102_v39, %v101_v38 }
 0x10e   :  { %v104_v41 = vrot.slane %v103_v40, 2 }
 0x110   :  { %v105_v42 = vadd.f32 %v104_v41, %v103_v40 }
 0x112   :  { %v106_v43 = vrot.slane %v105_v42, 1 }
 0x114   :  { %v107_v44 = vadd.f32 %v106_v43, %v105_v42 }
 0x116   :  { %135 = vpush %v107_v44 }
 0x147   :  { %s136_s9 = spop %135 }
 0x148   :  { %s111_s10 = sadd.f32 %s136_s9, %s110_s30 }
 0x14a   :  { %v112_v45 = vstv %s111_s10 }
 0x14b   :  { %113 = vst [vmem:[#allocation2] sm:$0xff] %v112_v45 }
 0x14c   :  { %151 = shalt.err (!%p148_p4)
}
 0x14d   :  { %123 = dma.vmem_to_hbm [thread:$0]  %s121_s8, 128, %s226_s6, [#allocation3]  }
 0x14e   :  { %160 = dma.done.wait [#allocation3], 128  }
 0x14f   :  { %161 = vsyncadd [#allocation3], 4294967168 }
 0x150   :  { %127 = vsyncpa [#allocation3], 1 }

</bundles_post_ra>
